<compile_context>
chip_gen: v5e
topology: v5e:2x2
jax: 0.10.0
libtpu: 0.0.40
codegen_flags: <defaults>
</compile_context>

<pallas_src>
import functools

import jax
import jax.numpy as jnp
import numpy as np
from jax import lax
from jax.experimental import pallas as pl
from jax.experimental.pallas import tpu as pltpu


def _round_up(x, m):
    return (x + m - 1) // m * m


# ----------------------------------------------------------------------------
# Parameter initialization: GlorotOrthogonal (orthogonal matrix rescaled so
# Var(W) = scale / (fan_in + fan_out)); bias is zero-initialized in the module.
# ----------------------------------------------------------------------------
def glorot_orthogonal(key, out_dim, in_dim, scale=2.0, dtype=jnp.float32):
    a = jax.random.normal(key, (max(out_dim, in_dim), min(out_dim, in_dim)),
                          dtype=jnp.float32)
    q, r = jnp.linalg.qr(a)
    q = q * jnp.sign(jnp.diag(r))[None, :]
    w = q[:out_dim, :in_dim] if out_dim >= in_dim else q[:in_dim, :out_dim].T
    target_var = scale / (in_dim + out_dim)
    w = w * jnp.sqrt(target_var / jnp.maximum(jnp.var(w), 1e-12))
    return w.astype(dtype)


# ----------------------------------------------------------------------------
# Pallas kernel: K-tiled (tm, tk) x (tn, tk)^T matmul with an f32 accumulator,
# fused bias + activation epilogue on the last K step.
# ----------------------------------------------------------------------------
def _dense_kernel(*refs, activation, use_bias, compute_dtype):
    if use_bias:
        x_ref, w_ref, b_ref, o_ref, acc_ref = refs
    else:
        x_ref, w_ref, o_ref, acc_ref = refs
    k = pl.program_id(2)

    @pl.when(k == 0)
    def _init():
        acc_ref[...] = jnp.zeros_like(acc_ref)

    x = x_ref[...]                      # (tm, tk)
    w = w_ref[...]                      # (tn, tk)  -- nn.Linear layout
    if compute_dtype is not None:
        x = x.astype(compute_dtype)
        w = w.astype(compute_dtype)
    # Contract last dims of both operands (x @ w.T) on the MXU, f32 accumulate.
    acc_ref[...] += lax.dot_general(
        x, w, dimension_numbers=(((1,), (1,)), ((), ())),
        preferred_element_type=jnp.float32)

    @pl.when(k == pl.num_programs(2) - 1)
    def _store():
        y = acc_ref[...]
        if use_bias:
            y = y + b_ref[...]          # (1, tn) f32 bias row, broadcast
        # f32 epilogue (v5e has no bf16 VPU/EUP datapath); cast on store.
        o_ref[...] = activation(y).astype(o_ref.dtype)


def _vmem_budget_and_limit():
    cap = 64 << 20                      # conservative default = v7x per-TC VMEM
    try:
        cap = int(pltpu.get_tpu_info().vmem_capacity_bytes)
    except Exception:                   # hw-info query only; never hides kernel errors
        pass
    budget = (cap * 3) // 4                             # tile-selection budget
    limit = min((cap * 27) // 32, cap - (4 << 20))      # Mosaic scratch headroom
    return budget, limit


def dense_layer(x, weight, bias=None, activation=jax.nn.silu, *,
                block_rows=512, block_cols=512, compute_dtype=None,
                out_dtype=None):
    """activation(x @ weight.T + bias) as one fused Pallas TPU kernel.

    x:       [..., in_dim]
    weight:  [out_dim, in_dim]   (nn.Linear layout, used as-is — no transpose)
    bias:    [out_dim] or None
    compute_dtype: dtype used on the MXU (e.g. jnp.bfloat16), cast in-kernel;
                   accumulation and the bias+activation epilogue stay f32.
    """
    *lead, in_dim = x.shape
    out_dim, in_dim_w = weight.shape
    assert in_dim == in_dim_w
    use_bias = bias is not None
    out_dtype = x.dtype if out_dtype is None else out_dtype

    x2 = x.reshape(-1, in_dim)
    n = x2.shape[0]

    x_it = np.dtype(x2.dtype).itemsize
    w_it = np.dtype(weight.dtype).itemsize
    o_it = np.dtype(out_dtype).itemsize
    row_align = 16 if np.dtype(x2.dtype) == np.dtype(jnp.bfloat16) else 8

    vmem_budget, vmem_limit = _vmem_budget_and_limit()

    # ---- tile selection -----------------------------------------------------
    tm = max(row_align, min(_round_up(block_rows, row_align),
                            _round_up(n, row_align)))
    tn = min(_round_up(block_cols, 128), _round_up(out_dim, 128))

    def vmem_need(tm_, tn_, tk_):
        return (2 * tm_ * tk_ * x_it                  # double-buffered x tile
                + 2 * tn_ * tk_ * w_it                # double-buffered W tile
                + (2 * tn_ * 4 if use_bias else 0)    # bias row
                + 2 * tm_ * tn_ * o_it                # double-buffered out tile
                + tm_ * tn_ * 4)                      # f32 accumulator scratch

    def pick_tk(tm_, tn_):
        if vmem_need(tm_, tn_, in_dim) <= vmem_budget:
            return in_dim                             # single K step
        for cand in (2048, 1024, 512, 256, 128):
            if in_dim % cand == 0 and vmem_need(tm_, tn_, cand) <= vmem_budget:
                return cand
        return None

    tk = pick_tk(tm, tn)
    while tk is None and (tm > row_align or tn > 128):
        if tn >= tm and tn > 128:
            tn = max(128, (tn // 2) // 128 * 128)
        elif tm > row_align:
            tm = max(row_align, _round_up(tm // 2, row_align))
        else:
            break
        tk = pick_tk(tm, tn)

    if tk is None:
        # TODO(synk): pathological in_dim (huge and not a multiple of 128) —
        # zero-pad K (mathematically exact) instead of OOMing VMEM.
        tk = 128
        for cand in (2048, 1024, 512, 256, 128):
            if vmem_need(tm, tn, cand) <= vmem_budget:
                tk = cand
                break
        k_pad = _round_up(in_dim, tk)
        x2 = jnp.pad(x2, ((0, 0), (0, k_pad - in_dim)))
        weight = jnp.pad(weight, ((0, 0), (0, k_pad - in_dim)))
    k_total = x2.shape[1]

    num_i = pl.cdiv(n, tm)
    num_j = pl.cdiv(out_dim, tn)
    num_k = k_total // tk

    # ---- grid order ---------------------------------------------------------
    # When there is a single K step, the operand whose block index depends only
    # on the OUTER grid axis is fetched from HBM exactly once; pick the cheaper
    # ordering.  (With K tiling, per-operand traffic is order-independent.)
    x_bytes = n * in_dim * x_it
    w_bytes = out_dim * in_dim * w_it
    if num_k == 1:
        rows_outer = (x_bytes + num_i * w_bytes) <= (w_bytes + num_j * x_bytes)
    else:
        rows_outer = True

    if rows_outer:
        grid = (num_i, num_j, num_k)
        x_map = lambda i, j, k: (i, k)
        w_map = lambda i, j, k: (j, k)
        b_map = lambda i, j, k: (0, j)
        o_map = lambda i, j, k: (i, j)
    else:
        grid = (num_j, num_i, num_k)
        x_map = lambda j, i, k: (i, k)
        w_map = lambda j, i, k: (j, k)
        b_map = lambda j, i, k: (0, j)
        o_map = lambda j, i, k: (i, j)

    in_specs = [pl.BlockSpec((tm, tk), x_map),        # activations
                pl.BlockSpec((tn, tk), w_map)]        # weight, [out_dim, in_dim]
    operands = [x2, weight]
    if use_bias:
        in_specs.append(pl.BlockSpec((1, tn), b_map))
        operands.append(bias.astype(jnp.float32).reshape(1, out_dim))

    kernel = functools.partial(_dense_kernel, activation=activation,
                               use_bias=use_bias, compute_dtype=compute_dtype)

    cost = pl.CostEstimate(
        flops=2 * n * in_dim * out_dim,
        transcendentals=n * out_dim,
        bytes_accessed=int(num_j * x_bytes + num_i * w_bytes
                           + (out_dim * 4 if use_bias else 0)
                           + n * out_dim * o_it))

    out2 = pl.pallas_call(
        kernel,
        out_shape=jax.ShapeDtypeStruct((n, out_dim), out_dtype),
        grid_spec=pltpu.PrefetchScalarGridSpec(
            num_scalar_prefetch=0,
            grid=grid,
            in_specs=in_specs,
            out_specs=pl.BlockSpec((tm, tn), o_map),
            scratch_shapes=[pltpu.VMEM((tm, tn), jnp.float32)]),
        compiler_params=pltpu.CompilerParams(
            dimension_semantics=("parallel", "parallel", "arbitrary"),
            vmem_limit_bytes=int(vmem_limit)),
        cost_estimate=cost,
    )(*operands)

    return out2.reshape(*lead, out_dim)


# ----------------------------------------------------------------------------
# Demo / correctness check (small shapes)
# ----------------------------------------------------------------------------
if __name__ == "__main__":
    key = jax.random.PRNGKey(0)
    k_x, k_w, k_b, k_x2, k_w2 = jax.random.split(key, 5)

    # --- Test 1: f32, with bias, 3-D input, out_dim not a multiple of 128 ----
    batch, seq, in_dim, out_dim = 2, 48, 64, 96
    x = jax.random.normal(k_x, (batch, seq, in_dim), dtype=jnp.float32)
    w = glorot_orthogonal(k_w, out_dim, in_dim)            # [out_dim, in_dim]
    b = 0.1 * jax.random.normal(k_b, (out_dim,), dtype=jnp.float32)

    out = jax.block_until_ready(dense_layer(x, w, b, activation=jax.nn.silu))
    ref = jax.nn.silu(
        jnp.matmul(x, w.T, precision=jax.lax.Precision.HIGHEST) + b)
    assert out.shape == (batch, seq, out_dim)
    assert jnp.allclose(out, ref, atol=2e-2, rtol=2e-2)

    # --- Test 2: bf16 compute, no bias, ragged row count ---------------------
    n2, in2, out2 = 50, 128, 128
    x2 = jax.random.normal(k_x2, (n2, in2), dtype=jnp.float32)
    w2 = glorot_orthogonal(k_w2, out2, in2)
    out2v = jax.block_until_ready(
        dense_layer(x2, w2, None, activation=jax.nn.silu,
                    compute_dtype=jnp.bfloat16))
    ref2 = jax.nn.silu(
        jnp.matmul(x2, w2.T, precision=jax.lax.Precision.HIGHEST))
    assert out2v.shape == (n2, out2)
    assert jnp.allclose(out2v, ref2, atol=5e-2, rtol=5e-2)

    print("KERNEL_OK")
</pallas_src>

<mosaic_0001>
module attributes {stable_mosaic.version = 11 : i64} {
  func.func @_dense_kernel(%arg0: i32, %arg1: i32, %arg2: i32, %arg3: memref<96x64xf32, #tpu.memory_space<vmem>>, %arg4: memref<128x64xf32, #tpu.memory_space<vmem>>, %arg5: memref<1x128xf32, #tpu.memory_space<vmem>>, %arg6: memref<96x128xf32, #tpu.memory_space<vmem>>, %arg7: memref<96x128xf32, #tpu.memory_space<vmem>>) attributes {dimension_semantics = [#tpu.dimension_semantics<parallel>, #tpu.dimension_semantics<parallel>, #tpu.dimension_semantics<arbitrary>], iteration_bounds = array<i64: 1, 1, 1>, scalar_prefetch = 0 : i64, scratch_operands = 1 : i64, tpu.core_type = #tpu.core_type<tc>, window_params = [{transform_indices = @transform_0, window_bounds = array<i64: 96, 64>}, {transform_indices = @transform_1, window_bounds = array<i64: 128, 64>}, {transform_indices = @transform_2, window_bounds = array<i64: 1, 128>}, {transform_indices = @transform_3, window_bounds = array<i64: 96, 128>}]} {
    %c0_i32 = arith.constant 0 : i32
    %0 = arith.cmpi eq, %arg2, %c0_i32 : i32
    %1 = arith.extui %0 : i1 to i32
    %c0_i32_0 = arith.constant 0 : i32
    %2 = arith.cmpi ne, %1, %c0_i32_0 : i32
    scf.if %2 {
      %cst_10 = arith.constant 0.000000e+00 : f32
      %12 = vector.broadcast %cst_10 : f32 to vector<96x128xf32>
      %c0_11 = arith.constant 0 : index
      %c0_12 = arith.constant 0 : index
      %13 = vector.load %arg7[%c0_11, %c0_12] : memref<96x128xf32, #tpu.memory_space<vmem>>, vector<96x128xf32>
      tpu.vector_store %arg7[%c0_11, %c0_12], %12 {strides = array<i32>} : memref<96x128xf32, #tpu.memory_space<vmem>>, vector<96x128xf32>,
    } else {
    }
    %c0 = arith.constant 0 : index
    %c0_1 = arith.constant 0 : index
    %3 = vector.load %arg3[%c0, %c0_1] : memref<96x64xf32, #tpu.memory_space<vmem>>, vector<96x64xf32>
    %c0_2 = arith.constant 0 : index
    %c0_3 = arith.constant 0 : index
    %4 = vector.load %arg4[%c0_2, %c0_3] : memref<128x64xf32, #tpu.memory_space<vmem>>, vector<128x64xf32>
    %c0_4 = arith.constant 0 : index
    %c0_5 = arith.constant 0 : index
    %5 = vector.load %arg7[%c0_4, %c0_5] : memref<96x128xf32, #tpu.memory_space<vmem>>, vector<96x128xf32>
    %cst = arith.constant dense<0.000000e+00> : vector<96x128xf32>
    %6 = tpu.matmul %3, %4, %cst {dimension_numbers = #tpu.dot_dimension_numbers<[1], [1], [0], [0], [0, 0, 1, 0], [], []>} : vector<96x64xf32>, vector<128x64xf32>, vector<96x128xf32> -> vector<96x128xf32>
    %7 = arith.addf %5, %6 : vector<96x128xf32>
    %c0_6 = arith.constant 0 : index
    %c0_7 = arith.constant 0 : index
    %8 = vector.load %arg7[%c0_6, %c0_7] : memref<96x128xf32, #tpu.memory_space<vmem>>, vector<96x128xf32>
    tpu.vector_store %arg7[%c0_6, %c0_7], %7 {strides = array<i32>} : memref<96x128xf32, #tpu.memory_space<vmem>>, vector<96x128xf32>,
    %c0_i32_8 = arith.constant 0 : i32
    %9 = arith.cmpi eq, %arg2, %c0_i32_8 : i32
    %10 = arith.extui %9 : i1 to i32
    %c0_i32_9 = arith.constant 0 : i32
    %11 = arith.cmpi ne, %10, %c0_i32_9 : i32
    scf.if %11 {
      %c0_10 = arith.constant 0 : index
      %c0_11 = arith.constant 0 : index
      %12 = vector.load %arg7[%c0_10, %c0_11] : memref<96x128xf32, #tpu.memory_space<vmem>>, vector<96x128xf32>
      %c0_12 = arith.constant 0 : index
      %c0_13 = arith.constant 0 : index
      %13 = vector.load %arg5[%c0_12, %c0_13] : memref<1x128xf32, #tpu.memory_space<vmem>>, vector<1x128xf32>
      %14 = vector.broadcast %13 : vector<1x128xf32> to vector<96x128xf32>
      %15 = arith.addf %12, %14 : vector<96x128xf32>
      %16 = arith.negf %15 : vector<96x128xf32>
      %17 = math.exp %16 : vector<96x128xf32>
      %cst_14 = arith.constant 1.000000e+00 : f32
      %18 = vector.broadcast %cst_14 : f32 to vector<96x128xf32>
      %19 = arith.addf %18, %17 : vector<96x128xf32>
      %20 = arith.divf %18, %19 : vector<96x128xf32>
      %21 = arith.mulf %15, %20 : vector<96x128xf32>
      %c0_15 = arith.constant 0 : index
      %c0_16 = arith.constant 0 : index
      %22 = vector.load %arg6[%c0_15, %c0_16] : memref<96x128xf32, #tpu.memory_space<vmem>>, vector<96x128xf32>
      tpu.vector_store %arg6[%c0_15, %c0_16], %21 {strides = array<i32>} : memref<96x128xf32, #tpu.memory_space<vmem>>, vector<96x128xf32>,
    } else {
    }
    return
  }
  func.func @transform_0(%arg0: i32, %arg1: i32, %arg2: i32) -> (i32, i32) {
    %c0_i32 = arith.constant 0 : i32
    return %arg0, %arg2 : i32, i32
  }
  func.func @transform_1(%arg0: i32, %arg1: i32, %arg2: i32) -> (i32, i32) {
    %c0_i32 = arith.constant 0 : i32
    return %arg1, %arg2 : i32, i32
  }
  func.func @transform_2(%arg0: i32, %arg1: i32, %arg2: i32) -> (i32, i32) {
    %c0_i32 = arith.constant 0 : i32
    %c0_i32_0 = arith.constant 0 : i32
    return %c0_i32, %arg1 : i32, i32
  }
  func.func @transform_3(%arg0: i32, %arg1: i32, %arg2: i32) -> (i32, i32) {
    %c0_i32 = arith.constant 0 : i32
    return %arg0, %arg1 : i32, i32
  }
}

</mosaic_0001>

<bundles_post_ra>
// kernel: tpu_custom_call.1
= control target key start
LH: loop header
LB: loop body
LE: loop exit
PB: predicated region body
PF: predicated region fallthrough
CT: control target
= control target key end

     0   :  { %vm71_vm0 = vcmask 523264   ;;  %s1053_s0 = inlined_call_operand.vmem [shape: f32[96,64], index: 0, kind: input, shape index: {}]   ;;  %s1054_s1 = inlined_call_operand.vmem [shape: f32[96,64], index: 1, kind: input, shape index: {}]   ;;  %s1055_s2 = inlined_call_operand.vmem [shape: f32[1,96], index: 2, kind: input, shape index: {}]   ;;  %s1056_s3 = inlined_call_operand.hbm [shape: f32[96,96], index: 3, kind: output, shape index: {}]  }
   0x1   :  { %v58_v0 = vld [vmem:[%s1054_s1 + $0x78] sm:$0xff]  ;;  %v57_v1 = vld [vmem:[%s1054_s1 + $0x70] sm:$0xff] }
   0x2   :  { %534 = vmatpush.xpose.msk.msra.mxu0 %vm71_vm0, %v58_v0  ;;  %574 = vmatpush.xpose.msk.msra.mxu1 %vm71_vm0, %v58_v0 }
   0x3   :  { %575 = vmatpush.xpose.msk.msra.mxu2 %vm71_vm0, %v58_v0  ;;  %576 = vmatpush.xpose.msk.msra.mxu3 %vm71_vm0, %v58_v0 }
   0x4   :  { %8 = vsyncpa [#allocation4], 0  ;;  %v56_v2 = vld [vmem:[%s1054_s1 + $0x68] sm:$0xff]  ;;  %v55_v3 = vld [vmem:[%s1054_s1 + $0x60] sm:$0xff]  ;;  %s522_s17 = sshll.u32 %s1056_s3, 4  ;;  %s701_s18 = smov 128   ;;  %s523_s17 = int_to_ptr.hbm [resolvable:$true] %s522_s17 }
   0x5   :  { %v54_v4 = vld [vmem:[%s1054_s1 + $0x58] sm:$0xff]  ;;  %v53_v5 = vld [vmem:[%s1054_s1 + $0x50] sm:$0xff]  ;;  %v52_v6 = vld [vmem:[%s1054_s1 + $0x48] sm:$0xff]  ;;  %s702_s19 = smov 8  }
   0x6   :  { %535 = vmatpush.xpose.msk.msra.mxu0 %vm71_vm0, %v57_v1  ;;  %577 = vmatpush.xpose.msk.msra.mxu1 %vm71_vm0, %v57_v1  ;;  %v51_v7 = vld [vmem:[%s1054_s1 + $0x40] sm:$0xff]  ;;  %v50_v8 = vld [vmem:[%s1054_s1 + $0x38] sm:$0xff]  ;;  %v49_v9 = vld [vmem:[%s1054_s1 + $0x30] sm:$0xff] }
   0x7   :  { %578 = vmatpush.xpose.msk.msra.mxu2 %vm71_vm0, %v57_v1  ;;  %579 = vmatpush.xpose.msk.msra.mxu3 %vm71_vm0, %v57_v1  ;;  %v48_v10 = vld [vmem:[%s1054_s1 + $0x28] sm:$0xff]  ;;  %v47_v11 = vld [vmem:[%s1054_s1 + $0x20] sm:$0xff]  ;;  %v46_v12 = vld [vmem:[%s1054_s1 + $0x18] sm:$0xff] }
   0x8   :  { %v45_v13 = vld [vmem:[%s1054_s1 + $0x10] sm:$0xff]  ;;  %v44_v14 = vld [vmem:[%s1054_s1 + $0x8] sm:$0xff]  ;;  %v43_v15 = vld [vmem:[%s1054_s1] sm:$0xff] }
   0x9   :  { %v31_v16 = vld [vmem:[%s1053_s0] sm:$0xff]  ;;  %v34_v17 = vld [vmem:[%s1053_s0 + $0x18] sm:$0xff]  ;;  %v37_v18 = vld [vmem:[%s1053_s0 + $0x30] sm:$0xff] }
   0xa   :  { %536 = vmatpush.xpose.msk.msra.mxu0 %vm71_vm0, %v56_v2  ;;  %580 = vmatpush.xpose.msk.msra.mxu1 %vm71_vm0, %v56_v2  ;;  %v40_v19 = vld [vmem:[%s1053_s0 + $0x48] sm:$0xff]  ;;  %v35_v21 = vld [vmem:[%s1053_s0 + $0x20] sm:$0xff]  ;;  %v38_v22 = vld [vmem:[%s1053_s0 + $0x38] sm:$0xff] }
   0xb   :  { %581 = vmatpush.xpose.msk.msra.mxu2 %vm71_vm0, %v56_v2  ;;  %582 = vmatpush.xpose.msk.msra.mxu3 %vm71_vm0, %v56_v2  ;;  %v32_v20 = vld [vmem:[%s1053_s0 + $0x8] sm:$0xff]  ;;  %v41_v23 = vld [vmem:[%s1053_s0 + $0x50] sm:$0xff]  ;;  %v39_v26 = vld [vmem:[%s1053_s0 + $0x40] sm:$0xff] }
   0xc   :  { %v33_v24 = vld [vmem:[%s1053_s0 + $0x10] sm:$0xff]  ;;  %v36_v25 = vld [vmem:[%s1053_s0 + $0x28] sm:$0xff]  ;;  %v42_v27 = vld [vmem:[%s1053_s0 + $0x58] sm:$0xff]  ;;  %s700_s0 = smov [#allocation3]  }
   0xd   :  { %v886_v28 = vld [vmem:[%s1055_s2] ss:$0 sm:$0xff]  ;;  %s520_s2 = sshll.u32 %s700_s0, 4  ;;  %s521_s2 = int_to_ptr.vmem [resolvable:$true] %s520_s2 }
   0xe   :  { %537 = vmatpush.xpose.msk.msra.mxu0 %vm71_vm0, %v55_v3  ;;  %583 = vmatpush.xpose.msk.msra.mxu1 %vm71_vm0, %v55_v3 }
   0xf   :  { %584 = vmatpush.xpose.msk.msra.mxu2 %vm71_vm0, %v55_v3  ;;  %585 = vmatpush.xpose.msk.msra.mxu3 %vm71_vm0, %v55_v3 }
  0x12   :  { %538 = vmatpush.xpose.msk.msra.mxu0 %vm71_vm0, %v54_v4  ;;  %586 = vmatpush.xpose.msk.msra.mxu1 %vm71_vm0, %v54_v4 }
  0x13   :  { %587 = vmatpush.xpose.msk.msra.mxu2 %vm71_vm0, %v54_v4  ;;  %588 = vmatpush.xpose.msk.msra.mxu3 %vm71_vm0, %v54_v4 }
  0x16   :  { %539 = vmatpush.xpose.msk.msra.mxu0 %vm71_vm0, %v53_v5  ;;  %589 = vmatpush.xpose.msk.msra.mxu1 %vm71_vm0, %v53_v5 }
  0x17   :  { %590 = vmatpush.xpose.msk.msra.mxu2 %vm71_vm0, %v53_v5  ;;  %591 = vmatpush.xpose.msk.msra.mxu3 %vm71_vm0, %v53_v5 }
  0x1a   :  { %540 = vmatpush.xpose.msk.msra.mxu0 %vm71_vm0, %v52_v6  ;;  %592 = vmatpush.xpose.msk.msra.mxu1 %vm71_vm0, %v52_v6 }
  0x1b   :  { %593 = vmatpush.xpose.msk.msra.mxu2 %vm71_vm0, %v52_v6  ;;  %594 = vmatpush.xpose.msk.msra.mxu3 %vm71_vm0, %v52_v6 }
  0x1e   :  { %541 = vmatpush.xpose.msk.msra.mxu0 %vm71_vm0, %v51_v7  ;;  %595 = vmatpush.xpose.msk.msra.mxu1 %vm71_vm0, %v51_v7 }
  0x1f   :  { %596 = vmatpush.xpose.msk.msra.mxu2 %vm71_vm0, %v51_v7  ;;  %597 = vmatpush.xpose.msk.msra.mxu3 %vm71_vm0, %v51_v7 }
  0x22   :  { %542 = vmatpush.xpose.msk.msra.mxu0 %vm71_vm0, %v50_v8  ;;  %598 = vmatpush.xpose.msk.msra.mxu1 %vm71_vm0, %v50_v8 }
  0x23   :  { %599 = vmatpush.xpose.msk.msra.mxu2 %vm71_vm0, %v50_v8  ;;  %600 = vmatpush.xpose.msk.msra.mxu3 %vm71_vm0, %v50_v8 }
  0x26   :  { %543 = vmatpush.xpose.msk.msra.mxu0 %vm71_vm0, %v49_v9  ;;  %601 = vmatpush.xpose.msk.msra.mxu1 %vm71_vm0, %v49_v9 }
  0x27   :  { %602 = vmatpush.xpose.msk.msra.mxu2 %vm71_vm0, %v49_v9  ;;  %603 = vmatpush.xpose.msk.msra.mxu3 %vm71_vm0, %v49_v9 }
  0x2a   :  { %544 = vmatpush.xpose.msk.msra.mxu0 %vm71_vm0, %v48_v10  ;;  %604 = vmatpush.xpose.msk.msra.mxu1 %vm71_vm0, %v48_v10 }
  0x2b   :  { %605 = vmatpush.xpose.msk.msra.mxu2 %vm71_vm0, %v48_v10  ;;  %606 = vmatpush.xpose.msk.msra.mxu3 %vm71_vm0, %v48_v10 }
  0x2e   :  { %545 = vmatpush.xpose.msk.msra.mxu0 %vm71_vm0, %v47_v11  ;;  %607 = vmatpush.xpose.msk.msra.mxu1 %vm71_vm0, %v47_v11 }
  0x2f   :  { %608 = vmatpush.xpose.msk.msra.mxu2 %vm71_vm0, %v47_v11  ;;  %609 = vmatpush.xpose.msk.msra.mxu3 %vm71_vm0, %v47_v11 }
  0x32   :  { %546 = vmatpush.xpose.msk.msra.mxu0 %vm71_vm0, %v46_v12  ;;  %610 = vmatpush.xpose.msk.msra.mxu1 %vm71_vm0, %v46_v12 }
  0x33   :  { %611 = vmatpush.xpose.msk.msra.mxu2 %vm71_vm0, %v46_v12  ;;  %612 = vmatpush.xpose.msk.msra.mxu3 %vm71_vm0, %v46_v12 }
  0x36   :  { %547 = vmatpush.xpose.msk.msra.mxu0 %vm71_vm0, %v45_v13  ;;  %613 = vmatpush.xpose.msk.msra.mxu1 %vm71_vm0, %v45_v13 }
  0x37   :  { %614 = vmatpush.xpose.msk.msra.mxu2 %vm71_vm0, %v45_v13  ;;  %615 = vmatpush.xpose.msk.msra.mxu3 %vm71_vm0, %v45_v13 }
  0x3a   :  { %548 = vmatpush.xpose.msk.msra.mxu0 %vm71_vm0, %v44_v14  ;;  %616 = vmatpush.xpose.msk.msra.mxu1 %vm71_vm0, %v44_v14 }
  0x3b   :  { %617 = vmatpush.xpose.msk.msra.mxu2 %vm71_vm0, %v44_v14  ;;  %618 = vmatpush.xpose.msk.msra.mxu3 %vm71_vm0, %v44_v14 }
  0x3e   :  { %549 = vmatpush.xpose.msk.msra.mxu0 %vm71_vm0, %v43_v15  ;;  %619 = vmatpush.xpose.msk.msra.mxu1 %vm71_vm0, %v43_v15 }
  0x3f   :  { %620 = vmatpush.xpose.msk.msra.mxu2 %vm71_vm0, %v43_v15  ;;  %621 = vmatpush.xpose.msk.msra.mxu3 %vm71_vm0, %v43_v15 }
  0x41   :  { %550 = vmatmul.msk.f32.vlgmr.msra.gmra.mxu0 %vm71_vm0, %v31_v16  ;;  %553 = vmatmul.msk.f32.vlgmr.msra.gmra.mxu1 %vm71_vm0, %v34_v17 }
  0x42   :  { %556 = vmatmul.msk.f32.vlgmr.msra.gmra.mxu2 %vm71_vm0, %v37_v18  ;;  %559 = vmatmul.msk.f32.vlgmr.msra.gmra.mxu3 %vm71_vm0, %v40_v19 }
  0x49   :  { %551 = vmatmul.msk.f32.gmra.mxu0 %vm71_vm0, %v32_v20  ;;  %554 = vmatmul.msk.f32.gmra.mxu1 %vm71_vm0, %v35_v21 }
  0x4a   :  { %557 = vmatmul.msk.f32.gmra.mxu2 %vm71_vm0, %v38_v22  ;;  %560 = vmatmul.msk.f32.gmra.mxu3 %vm71_vm0, %v41_v23 }
  0x51   :  { %552 = vmatmul.msk.f32.gmra.mxu0 %vm71_vm0, %v33_v24  ;;  %555 = vmatmul.msk.f32.gmra.mxu1 %vm71_vm0, %v36_v25 }
  0x52   :  { %558 = vmatmul.msk.f32.gmra.mxu2 %vm71_vm0, %v39_v26  ;;  %561 = vmatmul.msk.f32.gmra.mxu3 %vm71_vm0, %v42_v27 }
  0xbe   :  { %v173_v29 = vpop.f32.mrf.mxu0  ;;  %v182_v30 = vpop.f32.mrf.mxu1 }
  0xbf   :  { %v889_v31 = vadd.f32 %v886_v28, %v173_v29  ;;  %v892_v32 = vadd.f32 %v886_v28, %v182_v30 }
  0xc1   :  { %v562_v33 = vmul.f32 -1.442695, %v889_v31  ;;  %v565_v34 = vmul.f32 -1.442695, %v892_v32 }
  0xc3   :  { %626 = vpow2.f32 %v562_v33 }
  0xc4   :  { %628 = vpow2.f32 %v565_v34 }
  0xc5   :  { %v191_v35 = vpop.f32.mrf.mxu2  ;;  %v200_v36 = vpop.f32.mrf.mxu3 }
  0xc6   :  { %v897_v37 = vadd.f32 %v886_v28, %v191_v35  ;;  %v900_v38 = vadd.f32 %v886_v28, %v200_v36  ;;  %v176_v39 = vpop.f32.mrf.mxu0  ;;  %v185_v40 = vpop.f32.mrf.mxu1 }
  0xc7   :  { %v903_v41 = vadd.f32 %v886_v28, %v176_v39  ;;  %v906_v42 = vadd.f32 %v886_v28, %v185_v40 }
  0xc8   :  { %v568_v43 = vmul.f32 -1.442695, %v897_v37  ;;  %v571_v44 = vmul.f32 -1.442695, %v900_v38 }
  0xc9   :  { %v627_v45 = vpop.eup %626  ;;  %v563_v48 = vmul.f32 -1.442695, %v903_v41  ;;  %v566_v50 = vmul.f32 -1.442695, %v906_v42 }
  0xca   :  { %v629_v46 = vpop.eup %628  ;;  %v300_v47 = vadd.f32 1.0, %v627_v45  ;;  %630 = vpow2.f32 %v568_v43 }
  0xcb   :  { %v911_v49 = vadd.f32 1.0, %v629_v46  ;;  %632 = vpow2.f32 %v571_v44 }
  0xcc   :  { %634 = vrcp.f32 %v300_v47  ;;  %v321_v56 = vand.u32 2147483647, %v300_v47  ;;  %v323_v59 = vand.u32 2147483648, %v300_v47  ;;  %vm317_vm1 = vweird.f32 %v300_v47 }
  0xcd   :  { %636 = vrcp.f32 %v911_v49  ;;  %v194_v51 = vpop.f32.mrf.mxu2  ;;  %v203_v52 = vpop.f32.mrf.mxu3  ;;  %v366_v60 = vand.u32 2147483647, %v911_v49  ;;  %v368_v0 = vand.u32 2147483648, %v911_v49  ;;  %vm362_vm2 = vweird.f32 %v911_v49 }
  0xce   :  { %638 = vpow2.f32 %v563_v48  ;;  %v916_v53 = vadd.f32 %v886_v28, %v194_v51  ;;  %v179_v54 = vpop.f32.mrf.mxu0  ;;  %v919_v57 = vadd.f32 %v886_v28, %v203_v52  ;;  %v188_v62 = vpop.f32.mrf.mxu1  ;;  %vm933_vm3 = vcmp.eq.f32.partialorder %v321_v56, 8.507059e+37 }
  0xcf   :  { %640 = vpow2.f32 %v566_v50  ;;  %v929_v3 = vadd.f32 %v886_v28, %v179_v54  ;;  %v940_v10 = vadd.f32 %v886_v28, %v188_v62  ;;  %v324_v13 = vor.u32 1.1754944e-38, %v323_v59 }
  0xd0   :  { %v631_v55 = vpop.eup %630  ;;  %v569_v2 = vmul.f32 -1.442695, %v916_v53  ;;  %v572_v9 = vmul.f32 -1.442695, %v919_v57  ;;  %vm942_vm4 = vcmp.eq.f32.partialorder %v366_v60, 8.507059e+37  ;;  %v369_v16 = vor.u32 1.1754944e-38, %v368_v0 }
  0xd1   :  { %v633_v58 = vpop.eup %632  ;;  %v922_v61 = vadd.f32 1.0, %v631_v55  ;;  %v564_v17 = vmul.f32 -1.442695, %v929_v3  ;;  %v953_v22 = vmul.f32 -1.442695, %v940_v10 }
  0xd2   :  { %v635_v63 = vpop.eup %634  ;;  %v925_v1 = vadd.f32 1.0, %v633_v58 }
  0xd3   :  { %v637_v4 = vpop.eup %636  ;;  %v313_v5 = vmul.f32 %v635_v63, %v300_v47  ;;  %642 = vrcp.f32 %v922_v61  ;;  %vm318_vm5 = vweird.f32 %v635_v63  ;;  %v411_v25 = vand.u32 2147483647, %v922_v61 }
  0xd4   :  { %v639_v6 = vpop.eup %638  ;;  %v358_v8 = vmul.f32 %v637_v4, %v911_v49  ;;  %644 = vrcp.f32 %v925_v1  ;;  %vm363_vm6 = vweird.f32 %v637_v4  ;;  %v413_v26 = vand.u32 2147483648, %v922_v61  ;;  %vm319_vm7 = vmor %vm317_vm1, %vm318_vm5 }
  0xd5   :  { %v641_v11 = vpop.eup %640  ;;  %v314_v12 = vsub.f32 1.0, %v313_v5  ;;  %646 = vpow2.f32 %v569_v2  ;;  %v948_v19 = vadd.f32 1.0, %v639_v6  ;;  %vm407_vm8 = vweird.f32 %v922_v61  ;;  %vm364_vm10 = vmor %vm362_vm2, %vm363_vm6 }
  0xd6   :  { %v359_v15 = vsub.f32 1.0, %v358_v8  ;;  %v950_v20 = vadd.f32 1.0, %v641_v11  ;;  %648 = vpow2.f32 %v572_v9  ;;  %vm452_vm9 = vweird.f32 %v925_v1 }
  0xd7   :  { %v315_v18 = vmul.f32 %v635_v63, %v314_v12  ;;  %650 = vrcp.f32 %v948_v19  ;;  %v456_v34 = vand.u32 2147483647, %v925_v1  ;;  %v458_v35 = vand.u32 2147483648, %v925_v1  ;;  %v197_v12 = vpop.f32.mrf.mxu2 }
  0xd8   :  { %v360_v21 = vmul.f32 %v637_v4, %v359_v15  ;;  %652 = vrcp.f32 %v950_v20  ;;  %vm974_vm11 = vcmp.eq.f32.partialorder %v411_v25, 8.507059e+37  ;;  %v414_v48 = vor.u32 1.1754944e-38, %v413_v26 }
  0xd9   :  { %v643_v23 = vpop.eup %642  ;;  %v316_v24 = vadd.f32 %v635_v63, %v315_v18  ;;  %vm979_vm13 = vcmp.eq.f32.partialorder %v456_v34, 8.507059e+37  ;;  %654 = vpow2.f32 %v564_v17  ;;  %vm332_vm0 = vweird.f32 %v948_v19 }
  0xda   :  { %v361_v27 = vadd.f32 %v637_v4, %v360_v21  ;;  %v403_v29 = vmul.f32 %v643_v23, %v922_v61  ;;  %v645_v30 = vpop.eup %644  ;;  %vm408_vm12 = vweird.f32 %v643_v23  ;;  %v336_v62 = vand.u32 2147483647, %v948_v19 }
  0xdb   :  { %v320_v33 = vsel %vm319_vm7, %v635_v63, %v316_v24  ;;  %v647_v36 = vpop.eup %646  ;;  %v448_v44 = vmul.f32 %v645_v30, %v925_v1  ;;  %vm453_vm14 = vweird.f32 %v645_v30  ;;  %vm409_vm15 = vmor %vm407_vm8, %vm408_vm12  ;;  %v338_v61 = vand.u32 2147483648, %v948_v19 }
  0xdc   :  { %v325_v39 = vsel %vm933_vm3, %v324_v13, %v320_v33  ;;  %v365_v40 = vsel %vm364_vm10, %v637_v4, %v361_v27  ;;  %v404_v43 = vsub.f32 1.0, %v403_v29  ;;  %v649_v49 = vpop.eup %648  ;;  %v983_v56 = vadd.f32 1.0, %v647_v36  ;;  %vm454_vm1 = vmor %vm452_vm9, %vm453_vm14  ;;  %v206_v33 = vpop.f32.mrf.mxu3 }
  0xdd   :  { %v492_v45 = vmul.f32 %v325_v39, %v889_v31  ;;  %v370_v46 = vsel %vm942_vm4, %v369_v16, %v365_v40  ;;  %v449_v52 = vsub.f32 1.0, %v448_v44  ;;  %v651_v54 = vpop.eup %650  ;;  %v459_v31 = vor.u32 1.1754944e-38, %v458_v35 }
  0xde   :  { %v495_v50 = vmul.f32 %v370_v46, %v892_v32  ;;  %v405_v51 = vmul.f32 %v643_v23, %v404_v43  ;;  %v328_v60 = vmul.f32 %v651_v54, %v948_v19  ;;  %v653_v32 = vpop.eup %652  ;;  %656 = vrcp.f32 %v983_v56 }
  0xdf   :  { %504 = vst [vmem:[#allocation3] sm:$0xff] %v492_v45  ;;  %v450_v59 = vmul.f32 %v645_v30, %v449_v52  ;;  %v991_v63 = vadd.f32 1.0, %v649_v49  ;;  %v373_v5 = vmul.f32 %v653_v32, %v950_v20  ;;  %vm333_vm2 = vweird.f32 %v651_v54  ;;  %v655_v13 = vpop.eup %654 }
  0xe0   :  { %507 = vst [vmem:[#allocation3 + $0x18] sm:$0xff] %v495_v50  ;;  %v406_v58 = vadd.f32 %v643_v23, %v405_v51  ;;  %v329_v4 = vsub.f32 1.0, %v328_v60  ;;  %vm377_vm3 = vweird.f32 %v950_v20  ;;  %v381_v15 = vand.u32 2147483647, %v950_v20  ;;  %vm334_vm5 = vmor %vm332_vm0, %vm333_vm2 }
  0xe1   :  { %v451_v2 = vadd.f32 %v645_v30, %v450_v59  ;;  %v374_v11 = vsub.f32 1.0, %v373_v5  ;;  %v383_v1 = vand.u32 2147483648, %v950_v20  ;;  %658 = vrcp.f32 %v991_v63 }
  0xe2   :  { %v410_v0 = vsel %vm409_vm15, %v643_v23, %v406_v58  ;;  %v330_v9 = vmul.f32 %v651_v54, %v329_v4  ;;  %vm378_vm4 = vweird.f32 %v653_v32  ;;  %v339_v21 = vor.u32 1.1754944e-38, %v338_v61 }
  0xe3   :  { %v415_v6 = vsel %vm974_vm11, %v414_v48, %v410_v0  ;;  %v455_v8 = vsel %vm454_vm1, %v645_v30, %v451_v2  ;;  %v375_v18 = vmul.f32 %v653_v32, %v374_v11  ;;  %v1010_v23 = vadd.f32 1.0, %v655_v13  ;;  %vm379_vm7 = vmor %vm377_vm3, %vm378_vm4 }
  0xe4   :  { %v498_v7 = vmul.f32 %v415_v6, %v897_v37  ;;  %v460_v14 = vsel %vm979_vm13, %v459_v31, %v455_v8  ;;  %v331_v17 = vadd.f32 %v651_v54, %v330_v9  ;;  %v657_v37 = vpop.eup %656  ;;  %660 = vpow2.f32 %v953_v22 }
  0xe5   :  { %v501_v16 = vmul.f32 %v460_v14, %v900_v38  ;;  %v1014_v24 = vadd.f32 %v886_v28, %v197_v12  ;;  %vm337_vm6 = vcmp.eq.f32.partialorder %v336_v62, 8.507059e+37  ;;  %v376_v38 = vadd.f32 %v653_v32, %v375_v18 }
  0xe6   :  { %510 = vst [vmem:[#allocation3 + $0x30] sm:$0xff] %v498_v7  ;;  %v335_v25 = vsel %vm334_vm5, %v651_v54, %v331_v17  ;;  %v418_v26 = vmul.f32 %v657_v37, %v983_v56  ;;  %v384_v19 = vor.u32 1.1754944e-38, %v383_v1  ;;  %662 = vrcp.f32 %v1010_v23 }
  0xe7   :  { %513 = vst [vmem:[#allocation3 + $0x48] sm:$0xff] %v501_v16  ;;  %v340_v27 = vsel %vm337_vm6, %v339_v21, %v335_v25  ;;  %v380_v30 = vsel %vm379_vm7, %v653_v32, %v376_v38  ;;  %vm382_vm8 = vcmp.eq.f32.partialorder %v381_v15, 8.507059e+37  ;;  %v659_v34 = vpop.eup %658  ;;  %v426_v36 = vand.u32 2147483647, %v983_v56 }
  0xe8   :  { %v493_v29 = vmul.f32 %v340_v27, %v903_v41  ;;  %v419_v22 = vsub.f32 1.0, %v418_v26  ;;  %v385_v35 = vsel %vm382_vm8, %v384_v19, %v380_v30  ;;  %v428_v39 = vand.u32 2147483648, %v983_v56 }
  0xe9   :  { %v570_v40 = vmul.f32 -1.442695, %v1014_v24  ;;  %v496_v20 = vmul.f32 %v385_v35, %v906_v42  ;;  %vm423_vm9 = vweird.f32 %v657_v37  ;;  %v463_v44 = vmul.f32 %v659_v34, %v991_v63 }
  0xea   :  { %505 = vst [vmem:[#allocation3 + $0x8] sm:$0xff] %v493_v29  ;;  %v420_v43 = vmul.f32 %v657_v37, %v419_v22  ;;  %v661_v41 = vpop.eup %660  ;;  %vm422_vm10 = vweird.f32 %v983_v56  ;;  %v471_v45 = vand.u32 2147483647, %v991_v63  ;;  %v1029_v46 = vadd.f32 %v886_v28, %v206_v33 }
  0xeb   :  { %664 = vpow2.f32 %v570_v40  ;;  %508 = vst [vmem:[#allocation3 + $0x20] sm:$0xff] %v496_v20  ;;  %v464_v48 = vsub.f32 1.0, %v463_v44  ;;  %v473_v49 = vand.u32 2147483648, %v991_v63  ;;  %v305_v50 = vadd.f32 1.0, %v661_v41  ;;  %vm424_vm11 = vmor %vm422_vm10, %vm423_vm9 }
  0xec   :  { %v421_v47 = vadd.f32 %v657_v37, %v420_v43  ;;  %v663_v42 = vpop.eup %662  ;;  %vm427_vm12 = vcmp.eq.f32.partialorder %v426_v36, 8.507059e+37  ;;  %v429_v51 = vor.u32 1.1754944e-38, %v428_v39  ;;  %v573_v52 = vmul.f32 -1.442695, %v1029_v46 }
  0xed   :  { %v465_v55 = vmul.f32 %v659_v34, %v464_v48  ;;  %vm468_vm13 = vweird.f32 %v659_v34  ;;  %v343_v31 = vmul.f32 %v663_v42, %v1010_v23  ;;  %vm467_vm14 = vweird.f32 %v991_v63 }
  0xee   :  { %v425_v54 = vsel %vm424_vm11, %v657_v37, %v421_v47  ;;  %vm1035_vm15 = vcmp.eq.f32.partialorder %v471_v45, 8.507059e+37  ;;  %666 = vrcp.f32 %v305_v50  ;;  %v474_v60 = vor.u32 1.1754944e-38, %v473_v49  ;;  %vm469_vm0 = vmor %vm467_vm14, %vm468_vm13 }
  0xef   :  { %v430_v56 = vsel %vm427_vm12, %v429_v51, %v425_v54  ;;  %v466_v59 = vadd.f32 %v659_v34, %v465_v55  ;;  %v344_v32 = vsub.f32 1.0, %v343_v31  ;;  %vm347_vm1 = vweird.f32 %v1010_v23 }
  0xf0   :  { %v499_v58 = vmul.f32 %v430_v56, %v916_v53  ;;  %v351_v0 = vand.u32 2147483647, %v1010_v23  ;;  %v353_v2 = vand.u32 2147483648, %v1010_v23  ;;  %668 = vpow2.f32 %v573_v52 }
  0xf1   :  { %v665_v62 = vpop.eup %664  ;;  %v470_v63 = vsel %vm469_vm0, %v659_v34, %v466_v59  ;;  %v345_v4 = vmul.f32 %v663_v42, %v344_v32  ;;  %vm348_vm2 = vweird.f32 %v663_v42  ;;  %vm392_vm5 = vweird.f32 %v305_v50 }
  0xf2   :  { %511 = vst [vmem:[#allocation3 + $0x38] sm:$0xff] %v499_v58  ;;  %v308_v5 = vadd.f32 1.0, %v665_v62  ;;  %v475_v53 = vsel %vm1035_vm15, %v474_v60, %v470_v63  ;;  %vm349_vm3 = vmor %vm347_vm1, %vm348_vm2  ;;  %v354_v8 = vor.u32 1.1754944e-38, %v353_v2  ;;  %vm352_vm4 = vcmp.eq.f32.partialorder %v351_v0, 8.507059e+37 }
  0xf3   :  { %v502_v6 = vmul.f32 %v475_v53, %v919_v57  ;;  %v346_v61 = vadd.f32 %v663_v42, %v345_v4  ;;  %v398_v16 = vand.u32 2147483648, %v305_v50  ;;  %v396_v18 = vand.u32 2147483647, %v305_v50 }
  0xf4   :  { %670 = vrcp.f32 %v308_v5  ;;  %v667_v7 = vpop.eup %666  ;;  %v443_v26 = vand.u32 2147483648, %v308_v5  ;;  %v441_v19 = vand.u32 2147483647, %v308_v5  ;;  %vm437_vm10 = vweird.f32 %v308_v5 }
  0xf5   :  { %514 = vst [vmem:[#allocation3 + $0x50] sm:$0xff] %v502_v6  ;;  %v350_v9 = vsel %vm349_vm3, %v663_v42, %v346_v61  ;;  %v388_v11 = vmul.f32 %v667_v7, %v305_v50  ;;  %vm393_vm6 = vweird.f32 %v667_v7  ;;  %v399_v23 = vor.u32 1.1754944e-38, %v398_v16 }
  0xf6   :  { %v669_v12 = vpop.eup %668  ;;  %v355_v13 = vsel %vm352_vm4, %v354_v8, %v350_v9  ;;  %vm394_vm7 = vmor %vm392_vm5, %vm393_vm6  ;;  %vm397_vm8 = vcmp.eq.f32.partialorder %v396_v18, 8.507059e+37  ;;  %v444_v34 = vor.u32 1.1754944e-38, %v443_v26  ;;  %vm442_vm12 = vcmp.eq.f32.partialorder %v441_v19, 8.507059e+37 }
  0xf7   :  { %v494_v14 = vmul.f32 %v355_v13, %v929_v3  ;;  %v389_v15 = vsub.f32 1.0, %v388_v11  ;;  %v311_v1 = vadd.f32 1.0, %v669_v12 }
  0xf9   :  { %506 = vst [vmem:[#allocation3 + $0x10] sm:$0xff] %v494_v14  ;;  %v390_v57 = vmul.f32 %v667_v7, %v389_v15  ;;  %672 = vrcp.f32 %v311_v1  ;;  %v488_v40 = vand.u32 2147483648, %v311_v1  ;;  %v486_v44 = vand.u32 2147483647, %v311_v1 }
  0xfa   :  { %v671_v17 = vpop.eup %670  ;;  %vm482_vm14 = vweird.f32 %v311_v1 }
  0xfb   :  { %v433_v37 = vmul.f32 %v671_v17, %v308_v5  ;;  %v391_v21 = vadd.f32 %v667_v7, %v390_v57  ;;  %vm438_vm9 = vweird.f32 %v671_v17  ;;  %vm487_vm0 = vcmp.eq.f32.partialorder %v486_v44, 8.507059e+37 }
  0xfc   :  { %vm439_vm11 = vmor %vm437_vm10, %vm438_vm9 }
  0xfd   :  { %v434_v25 = vsub.f32 1.0, %v433_v37  ;;  %v395_v38 = vsel %vm394_vm7, %v667_v7, %v391_v21 }
  0xfe   :  { %v400_v27 = vsel %vm397_vm8, %v399_v23, %v395_v38 }
  0xff   :  { %v435_v3 = vmul.f32 %v671_v17, %v434_v25  ;;  %v673_v29 = vpop.eup %672  ;;  %v497_v30 = vmul.f32 %v400_v27, %v940_v10  ;;  %v489_v10 = vor.u32 1.1754944e-38, %v488_v40 }
 0x100   :  { %v478_v33 = vmul.f32 %v673_v29, %v311_v1  ;;  %vm483_vm13 = vweird.f32 %v673_v29 }
 0x101   :  { %v436_v22 = vadd.f32 %v671_v17, %v435_v3  ;;  %509 = vst [vmem:[#allocation3 + $0x28] sm:$0xff] %v497_v30  ;;  %vm484_vm15 = vmor %vm482_vm14, %vm483_vm13 }
 0x102   :  { %v479_v36 = vsub.f32 1.0, %v478_v33 }
 0x103   :  { %v440_v35 = vsel %vm439_vm11, %v671_v17, %v436_v22 }
 0x104   :  { %v445_v39 = vsel %vm442_vm12, %v444_v34, %v440_v35  ;;  %v480_v43 = vmul.f32 %v673_v29, %v479_v36 }
 0x105   :  { %v500_v20 = vmul.f32 %v445_v39, %v1014_v24 }
 0x106   :  { %v481_v41 = vadd.f32 %v673_v29, %v480_v43 }
 0x107   :  { %512 = vst [vmem:[#allocation3 + $0x40] sm:$0xff] %v500_v20 }
 0x108   :  { %v485_v45 = vsel %vm484_vm15, %v673_v29, %v481_v41 }
 0x109   :  { %v490_v47 = vsel %vm487_vm0, %v489_v10, %v485_v45 }
 0x10a   :  { %v503_v24 = vmul.f32 %v490_v47, %v1029_v46 }
 0x10c   :  { %515 = vst [vmem:[#allocation3 + $0x58] sm:$0xff] %v503_v24 }
 0x10d   :  { %528 = dma.vmem_to_hbm [thread:$0]  %s521_s2, 1536, %s523_s17, [#allocation4], %s701_s18, %s701_s18, %s702_s19  }
 0x10e   :  { %698 = dma.done.wait [#allocation4], 1536  }
 0x10f   :  { %699 = vsyncadd [#allocation4], 4294965760 }
 0x110   :  { %533 = vsyncpa [#allocation4], 1 }

</bundles_post_ra>
